<compile_context>
chip_gen: v7x
topology: tpu7x:2x2x1
jax: 0.10.0
libtpu: 0.0.40
codegen_flags: <defaults>
</compile_context>

<pallas_src>
import functools

import jax
import jax.numpy as jnp
from jax.experimental import pallas as pl
from jax.experimental.pallas import tpu as pltpu

INPUT_SIZE = 18
H1 = 58
H2 = 58
OUT = 256

_LANE = 128  # lane width the narrow (tile, 18)/(tile, 58) blocks pad to in VMEM


def _round_up(x, m):
    return ((x + m - 1) // m) * m


# ---------------------------------------------------------------------------
# Per-TPU-generation configuration.
#   (scoped-VMEM cap, max batch-tile rows, min grid steps, bf16-operand default)
# ---------------------------------------------------------------------------
_GEN_CFG = {
    "v5e": (96 * 2**20, 8192, 1, True),    # 128 MiB VMEM, 1 TC, f32 MXU is slow
    "v6e": (96 * 2**20, 8192, 1, False),   # 128 MiB VMEM, 1 TC
    "v7x": (36 * 2**20, 4096, 2, False),   # 64 MiB VMEM, 2 TCs
    "unknown": (36 * 2**20, 4096, 2, False),  # conservative fallback
}


def _tpu_generation():
    try:
        kind = jax.devices()[0].device_kind.lower()
    except Exception:
        return "unknown"
    if "v5 lite" in kind or "v5e" in kind or "v5lite" in kind:
        return "v5e"
    if "v6" in kind:
        return "v6e"
    if "v7" in kind:
        return "v7x"
    return "unknown"


def _footprint_bytes(tile, x_bytes, out_bytes):
    """Lane-padding-aware VMEM footprint of one pipelined grid step."""
    x_buf = 2 * tile * _LANE * x_bytes     # x block: 18 -> 128 lanes, double-buffered
    out_buf = 2 * tile * OUT * out_bytes   # out block: 256 lanes, double-buffered
    mid_buf = 3 * tile * _LANE * 4         # f32 h1/h2 intermediates (58 -> 128 lanes) + copies
    w_buf = 2 * 2**20                      # padded, double-buffered weights/biases (generous)
    return x_buf + out_buf + mid_buf + w_buf


def _choose_tile(batch, *, vmem_cap, max_tile, min_steps, x_bytes, out_bytes):
    """Return (tile_rows, grid_steps).

    Largest tile whose real (lane-padded) footprint fits the per-generation
    VMEM cap, then as many equal-size steps as needed to cover the batch
    (>= min_steps, so e.g. both v7x TensorCores get work).  The tile is only
    rounded up to 8 rows (sublane requirement), which keeps padding minimal.
    """
    t = max_tile
    while t > 256 and _footprint_bytes(t, x_bytes, out_bytes) > vmem_cap:
        t -= 256
    max_fit = max(256, t)

    steps = max(min_steps, pl.cdiv(batch, max_fit))
    tile = min(_round_up(pl.cdiv(batch, steps), 8), max_fit)
    return tile, steps


def _mlp_kernel(x_ref, w1_ref, b1_ref, w2_ref, b2_ref, w3_ref, b3_ref, o_ref,
                *, approx_recip, mm_precision):
    def softsign(v):
        if approx_recip:
            # EUP reciprocal: runs in an otherwise-idle slot; only used on the
            # reduced-precision (bf16) path.
            return v * pl.reciprocal(1.0 + jnp.abs(v), approx=True)
        return v / (1.0 + jnp.abs(v))

    x = x_ref[...]                                    # (tile, 18), f32 or bf16
    h = jnp.dot(x, w1_ref[...], preferred_element_type=jnp.float32,
                precision=mm_precision) + b1_ref[...]
    h = softsign(h)                                   # (tile, 58) f32
    h = jnp.dot(h.astype(w2_ref.dtype), w2_ref[...],
                preferred_element_type=jnp.float32,
                precision=mm_precision) + b2_ref[...]
    h = softsign(h)
    y = jnp.dot(h.astype(w3_ref.dtype), w3_ref[...],
                preferred_element_type=jnp.float32,
                precision=mm_precision) + b3_ref[...]
    o_ref[...] = y.astype(o_ref.dtype)


@functools.partial(jax.jit, static_argnames=("tb", "use_bf16", "out_dtype"))
def lw_abs_forward(x, params, *, tb=None, use_bf16=None, out_dtype=jnp.float32):
    w1, b1, w2, b2, w3, b3 = params
    B = x.shape[0]

    gen = _tpu_generation()
    vmem_cap, gen_max_tile, min_steps, default_bf16 = _GEN_CFG.get(
        gen, _GEN_CFG["unknown"])
    if use_bf16 is None:
        use_bf16 = default_bf16

    x_bytes = 2 if use_bf16 else 4
    out_bytes = jnp.dtype(out_dtype).itemsize
    max_tile = gen_max_tile if tb is None else max(256, _round_up(int(tb), 256))

    tile, steps = _choose_tile(B, vmem_cap=vmem_cap, max_tile=max_tile,
                               min_steps=min_steps,
                               x_bytes=x_bytes, out_bytes=out_bytes)
    Bp = tile * steps

    if use_bf16:
        # Cast operands in the wrapper: halves the input DMA and removes the
        # per-tile cast in the kernel.  Accumulation / bias add / softsign
        # remain f32 in-kernel.
        x = x.astype(jnp.bfloat16)
        w1, w2, w3 = (w.astype(jnp.bfloat16) for w in (w1, w2, w3))

    if Bp != B:
        # Padding is only up to the 8-row tile rounding (plus the forced extra
        # step on v7x for tiny batches); padded rows are sliced off below.
        x = jnp.pad(x, ((0, Bp - B), (0, 0)))

    # f32 path: full-precision MXU operands so the default path tracks the
    # PyTorch f32 module; the bf16 path is deliberately reduced precision.
    mm_precision = None if use_bf16 else jax.lax.Precision.HIGHEST

    kernel = functools.partial(_mlp_kernel,
                               approx_recip=bool(use_bf16),
                               mm_precision=mm_precision)

    vmem_limit = int(min(vmem_cap,
                         max(_footprint_bytes(tile, x_bytes, out_bytes) + 4 * 2**20,
                             16 * 2**20)))

    def batch_map(i):
        return (i, 0)

    def full_map(i):
        return (0, 0)

    out = pl.pallas_call(
        kernel,
        out_shape=jax.ShapeDtypeStruct((Bp, OUT), out_dtype),
        grid_spec=pltpu.PrefetchScalarGridSpec(
            num_scalar_prefetch=0,
            grid=(steps,),
            in_specs=[
                pl.BlockSpec((tile, INPUT_SIZE), batch_map),  # x
                pl.BlockSpec((INPUT_SIZE, H1), full_map),     # w1 (resident)
                pl.BlockSpec((1, H1), full_map),              # b1
                pl.BlockSpec((H1, H2), full_map),             # w2
                pl.BlockSpec((1, H2), full_map),              # b2
                pl.BlockSpec((H2, OUT), full_map),            # w3
                pl.BlockSpec((1, OUT), full_map),             # b3
            ],
            out_specs=pl.BlockSpec((tile, OUT), batch_map),
        ),
        compiler_params=pltpu.CompilerParams(
            dimension_semantics=("parallel",),
            vmem_limit_bytes=vmem_limit,
        ),
    )(x, w1, b1, w2, b2, w3, b3)

    return out[:B]


def init_params(key):
    """Deterministic init, mimicking nn.Linear's U(-1/sqrt(fan_in), 1/sqrt(fan_in))."""
    def linear(key, fan_in, fan_out):
        kw, kb = jax.random.split(key)
        bound = 1.0 / jnp.sqrt(fan_in)
        w = jax.random.uniform(kw, (fan_in, fan_out), jnp.float32, -bound, bound)
        b = jax.random.uniform(kb, (1, fan_out), jnp.float32, -bound, bound)
        return w, b

    k1, k2, k3 = jax.random.split(key, 3)
    w1, b1 = linear(k1, INPUT_SIZE, H1)
    w2, b2 = linear(k2, H1, H2)
    w3, b3 = linear(k3, H2, OUT)
    return (w1, b1, w2, b2, w3, b3)


def _softsign_ref(x):
    return x / (1.0 + jnp.abs(x))


def reference_forward(x, params):
    """True-f32 reference (explicit HIGHEST precision so XLA does not silently
    drop to bf16 MXU operands)."""
    w1, b1, w2, b2, w3, b3 = params
    hp = jax.lax.Precision.HIGHEST
    h = _softsign_ref(jnp.dot(x, w1, precision=hp) + b1)
    h = _softsign_ref(jnp.dot(h, w2, precision=hp) + b2)
    return jnp.dot(h, w3, precision=hp) + b3


if __name__ == "__main__":
    key = jax.random.PRNGKey(0)
    kp, kx = jax.random.split(key)

    params = init_params(kp)

    # Small test shape; B deliberately not a multiple of 8 to exercise the
    # tile-rounding / batch-padding path.
    B = 12
    x = jax.random.normal(kx, (B, INPUT_SIZE), jnp.float32)

    ref = reference_forward(x, params)

    # f32 path (HIGHEST-precision MXU operands; matches PyTorch f32 semantics).
    out = jax.block_until_ready(lw_abs_forward(x, params, use_bf16=False))
    assert out.shape == (B, OUT), out.shape
    assert jnp.allclose(out, ref, atol=1e-5, rtol=1e-5), "f32 mismatch vs reference"

    # bf16-operand path (default on v5e); looser tolerance is expected.
    out_bf16 = jax.block_until_ready(lw_abs_forward(x, params, use_bf16=True))
    assert out_bf16.shape == (B, OUT), out_bf16.shape
    assert jnp.allclose(out_bf16, ref, atol=5e-2, rtol=5e-2), "bf16 operand mismatch"

    # bf16-output path (halves the dominant HBM write traffic).
    out_bf16o = jax.block_until_ready(
        lw_abs_forward(x, params, use_bf16=True, out_dtype=jnp.bfloat16))
    assert out_bf16o.dtype == jnp.bfloat16
    assert jnp.allclose(out_bf16o.astype(jnp.float32), ref, atol=5e-2, rtol=5e-2), \
        "bf16 output mismatch"

    print("KERNEL_OK")
</pallas_src>

<mosaic_0001>
module attributes {stable_mosaic.version = 11 : i64} {
  func.func @_mlp_kernel(%arg0: i32, %arg1: memref<8x18xf32, #tpu.memory_space<vmem>>, %arg2: memref<18x58xf32, #tpu.memory_space<vmem>>, %arg3: memref<1x58xf32, #tpu.memory_space<vmem>>, %arg4: memref<58x58xf32, #tpu.memory_space<vmem>>, %arg5: memref<1x58xf32, #tpu.memory_space<vmem>>, %arg6: memref<58x256xf32, #tpu.memory_space<vmem>>, %arg7: memref<1x256xf32, #tpu.memory_space<vmem>>, %arg8: memref<8x256xf32, #tpu.memory_space<vmem>>) attributes {dimension_semantics = [#tpu.dimension_semantics<parallel>], iteration_bounds = array<i64: 2>, scalar_prefetch = 0 : i64, scratch_operands = 0 : i64, tpu.core_type = #tpu.core_type<tc>, window_params = [{transform_indices = @transform_0, window_bounds = array<i64: 8, 18>}, {pipeline_mode = #tpu.pipeline_mode<synchronous>, transform_indices = @transform_1, window_bounds = array<i64: 18, 58>}, {pipeline_mode = #tpu.pipeline_mode<synchronous>, transform_indices = @transform_2, window_bounds = array<i64: 1, 58>}, {pipeline_mode = #tpu.pipeline_mode<synchronous>, transform_indices = @transform_3, window_bounds = array<i64: 58, 58>}, {pipeline_mode = #tpu.pipeline_mode<synchronous>, transform_indices = @transform_4, window_bounds = array<i64: 1, 58>}, {pipeline_mode = #tpu.pipeline_mode<synchronous>, transform_indices = @transform_5, window_bounds = array<i64: 58, 256>}, {pipeline_mode = #tpu.pipeline_mode<synchronous>, transform_indices = @transform_6, window_bounds = array<i64: 1, 256>}, {transform_indices = @transform_7, window_bounds = array<i64: 8, 256>}]} {
    %c0 = arith.constant 0 : index
    %c0_0 = arith.constant 0 : index
    %0 = vector.load %arg1[%c0, %c0_0] : memref<8x18xf32, #tpu.memory_space<vmem>>, vector<8x18xf32>
    %c0_1 = arith.constant 0 : index
    %c0_2 = arith.constant 0 : index
    %1 = vector.load %arg2[%c0_1, %c0_2] : memref<18x58xf32, #tpu.memory_space<vmem>>, vector<18x58xf32>
    %cst = arith.constant dense<0.000000e+00> : vector<8x58xf32>
    %2 = tpu.matmul %0, %1, %cst {dimension_numbers = #tpu.dot_dimension_numbers<[1], [0], [0], [1], [0, 0, 1, 1], [], []>, precision = #tpu.contract_precision<fp32>} : vector<8x18xf32>, vector<18x58xf32>, vector<8x58xf32> -> vector<8x58xf32>
    %c0_3 = arith.constant 0 : index
    %c0_4 = arith.constant 0 : index
    %3 = vector.load %arg3[%c0_3, %c0_4] : memref<1x58xf32, #tpu.memory_space<vmem>>, vector<1x58xf32>
    %4 = vector.broadcast %3 : vector<1x58xf32> to vector<8x58xf32>
    %5 = arith.addf %2, %4 : vector<8x58xf32>
    %6 = math.absf %5 : vector<8x58xf32>
    %cst_5 = arith.constant 1.000000e+00 : f32
    %7 = vector.broadcast %cst_5 : f32 to vector<8x58xf32>
    %8 = arith.addf %7, %6 : vector<8x58xf32>
    %9 = arith.divf %5, %8 : vector<8x58xf32>
    %c0_6 = arith.constant 0 : index
    %c0_7 = arith.constant 0 : index
    %10 = vector.load %arg4[%c0_6, %c0_7] : memref<58x58xf32, #tpu.memory_space<vmem>>, vector<58x58xf32>
    %cst_8 = arith.constant dense<0.000000e+00> : vector<8x58xf32>
    %11 = tpu.matmul %9, %10, %cst_8 {dimension_numbers = #tpu.dot_dimension_numbers<[1], [0], [0], [1], [0, 0, 1, 1], [], []>, precision = #tpu.contract_precision<fp32>} : vector<8x58xf32>, vector<58x58xf32>, vector<8x58xf32> -> vector<8x58xf32>
    %c0_9 = arith.constant 0 : index
    %c0_10 = arith.constant 0 : index
    %12 = vector.load %arg5[%c0_9, %c0_10] : memref<1x58xf32, #tpu.memory_space<vmem>>, vector<1x58xf32>
    %13 = vector.broadcast %12 : vector<1x58xf32> to vector<8x58xf32>
    %14 = arith.addf %11, %13 : vector<8x58xf32>
    %15 = math.absf %14 : vector<8x58xf32>
    %cst_11 = arith.constant 1.000000e+00 : f32
    %16 = vector.broadcast %cst_11 : f32 to vector<8x58xf32>
    %17 = arith.addf %16, %15 : vector<8x58xf32>
    %18 = arith.divf %14, %17 : vector<8x58xf32>
    %c0_12 = arith.constant 0 : index
    %c0_13 = arith.constant 0 : index
    %19 = vector.load %arg6[%c0_12, %c0_13] : memref<58x256xf32, #tpu.memory_space<vmem>>, vector<58x256xf32>
    %cst_14 = arith.constant dense<0.000000e+00> : vector<8x256xf32>
    %20 = tpu.matmul %18, %19, %cst_14 {dimension_numbers = #tpu.dot_dimension_numbers<[1], [0], [0], [1], [0, 0, 1, 1], [], []>, precision = #tpu.contract_precision<fp32>} : vector<8x58xf32>, vector<58x256xf32>, vector<8x256xf32> -> vector<8x256xf32>
    %c0_15 = arith.constant 0 : index
    %c0_16 = arith.constant 0 : index
    %21 = vector.load %arg7[%c0_15, %c0_16] : memref<1x256xf32, #tpu.memory_space<vmem>>, vector<1x256xf32>
    %22 = vector.broadcast %21 : vector<1x256xf32> to vector<8x256xf32>
    %23 = arith.addf %20, %22 : vector<8x256xf32>
    %c0_17 = arith.constant 0 : index
    %c0_18 = arith.constant 0 : index
    %24 = vector.load %arg8[%c0_17, %c0_18] : memref<8x256xf32, #tpu.memory_space<vmem>>, vector<8x256xf32>
    tpu.vector_store %arg8[%c0_17, %c0_18], %23 {strides = array<i32>} : memref<8x256xf32, #tpu.memory_space<vmem>>, vector<8x256xf32>,
    return
  }
  func.func @transform_0(%arg0: i32) -> (i32, i32) {
    %c0_i32 = arith.constant 0 : i32
    %c0_i32_0 = arith.constant 0 : i32
    return %arg0, %c0_i32 : i32, i32
  }
  func.func @transform_1(%arg0: i32) -> (i32, i32) {
    %c0_i32 = arith.constant 0 : i32
    %c0_i32_0 = arith.constant 0 : i32
    %c0_i32_1 = arith.constant 0 : i32
    return %c0_i32, %c0_i32_0 : i32, i32
  }
  func.func @transform_2(%arg0: i32) -> (i32, i32) {
    %c0_i32 = arith.constant 0 : i32
    %c0_i32_0 = arith.constant 0 : i32
    %c0_i32_1 = arith.constant 0 : i32
    return %c0_i32, %c0_i32_0 : i32, i32
  }
  func.func @transform_3(%arg0: i32) -> (i32, i32) {
    %c0_i32 = arith.constant 0 : i32
    %c0_i32_0 = arith.constant 0 : i32
    %c0_i32_1 = arith.constant 0 : i32
    return %c0_i32, %c0_i32_0 : i32, i32
  }
  func.func @transform_4(%arg0: i32) -> (i32, i32) {
    %c0_i32 = arith.constant 0 : i32
    %c0_i32_0 = arith.constant 0 : i32
    %c0_i32_1 = arith.constant 0 : i32
    return %c0_i32, %c0_i32_0 : i32, i32
  }
  func.func @transform_5(%arg0: i32) -> (i32, i32) {
    %c0_i32 = arith.constant 0 : i32
    %c0_i32_0 = arith.constant 0 : i32
    %c0_i32_1 = arith.constant 0 : i32
    return %c0_i32, %c0_i32_0 : i32, i32
  }
  func.func @transform_6(%arg0: i32) -> (i32, i32) {
    %c0_i32 = arith.constant 0 : i32
    %c0_i32_0 = arith.constant 0 : i32
    %c0_i32_1 = arith.constant 0 : i32
    return %c0_i32, %c0_i32_0 : i32, i32
  }
  func.func @transform_7(%arg0: i32) -> (i32, i32) {
    %c0_i32 = arith.constant 0 : i32
    %c0_i32_0 = arith.constant 0 : i32
    return %arg0, %c0_i32 : i32, i32
  }
}

</mosaic_0001>

<bundles_post_ra>
// kernel: lw_abs_forward.1
= control target key start
LH: loop header
LB: loop body
LE: loop exit
PB: predicated region body
PF: predicated region fallthrough
CT: control target
= control target key end

     0   :  { %12 = vsyncpa [#allocation3], 0  ;;  %s3467_s0 = inlined_call_operand.vmem [shape: f32[16,18], index: 0, kind: input, shape index: {}]   ;;  %s3468_s1 = inlined_call_operand.vmem [shape: f32[18,58], index: 1, kind: input, shape index: {}]   ;;  %s3469_s2 = inlined_call_operand.vmem [shape: f32[1,58], index: 2, kind: input, shape index: {}]   ;;  %s3470_s3 = inlined_call_operand.hbm [shape: f32[58,58], index: 3, kind: input, shape index: {}]   ;;  %s3471_s4 = inlined_call_operand.vmem [shape: f32[1,58], index: 4, kind: input, shape index: {}]   ;;  %s3472_s5 = inlined_call_operand.hbm [shape: f32[58,256], index: 5, kind: input, shape index: {}]   ;;  %s3473_s6 = inlined_call_operand.vmem [shape: f32[1,256], index: 6, kind: input, shape index: {}]   ;;  %s3474_s7 = inlined_call_operand.hbm [shape: f32[16,256], index: 7, kind: output, shape index: {}]  }
   0x1   :  { %13 = vsyncpa [#allocation6], 0 }
   0x2   :  { %14 = vsyncpa [#allocation4], 0 }
   0x3   :  { %16 = vsyncpa [#allocation4 + $0x1], 0  ;;  %s2877_s24 = smov 0   ;;  %s2879_s25 = smov 0  }
   0x4   :  { %s2881_s26 = smov 0   ;;  %s2883_s27 = smov 0  }
   0x5 LB: > { %s2898_s28 = sadd.s32 4294967295, %s2825_s27   ;;  %s2144_s29 = sadd.s32 4294967294, %s2825_s27   ;;  %s2825_s27 = sphi %s2883_s27, %s3499_s27   ;;  %s2821_s26 = sphi %s2881_s26, %s3498_s26   ;;  %s2817_s25 = sphi %s2879_s25, %s3497_s25   ;;  %s2813_s24 = sphi %s2877_s24, %s3496_s24  }
   0x6   : > { %s2902_s30 = sadd.s32 1, %s2825_s27   ;;  %s181_s8 = sadd.s32 1, %s2821_s26 }
   0x7   : > { %s178_s9 = ssub.s32 %s2825_s27, %s2902_s30  ;;  %p191_p0 = scmp.ne.s32.totalorder %s2821_s26, %s2817_s25 }
   0x8   : > { %p179_p1 = scmp.eq.s32.totalorder %s178_s9, 0  ;;  %p192_p2 = scmp.eq.s32.totalorder %s2898_s28, 1 }
   0x9   : > { %p197_p3 = scmp.ne.s32.totalorder %s2817_s25, %s2813_s24  ;;  %p198_p4 = scmp.eq.s32.totalorder %s2144_s29, 1 }
   0xa   : > { %s2913_s10 = scalar_select %p179_p1, %s2821_s26, %s181_s8  }
   0xb   : > { %p2915_p5 = por %p192_p2, %p191_p0  ;;  %p2919_p6 = por %p198_p4, %p197_p3 }
   0xc   : > { %3481 = sst [smem:[#allocation11_spill]] %s2913_s10  ;;  %p2145_p7 = scmp.ge.s32.totalorder %s2825_s27, 1 }
   0xd   : > { %s3482_s11 = scalar_select %p2915_p5, 1, 0 }
   0xe   : > { %s3483_s12 = scalar_select %p2919_p6, 1, 0 }
   0xf   : > { %p205_p8 = scmp.lt.s32.totalorder %s2825_s27, 3  ;;  %p3475_p9 = scmp.eq.s32.totalorder %s2898_s28, 0 }
  0x10   : > { %s2827_s14 = smov [#allocation2]   ;;  %s2828_s17 = smov [#allocation5]  }
  0x11   : > { %p2926_p10 = pnand %p2145_p7, %p205_p8  ;;  %s223_s15 = sshll.u32 %s2827_s14, 4  ;;  %s224_s15 = int_to_ptr.vmem [resolvable:$true] %s223_s15 }
  0x12   : > { %s239_s18 = sshll.u32 %s2828_s17, 4  ;;  %s2699_s21 = scalar_lea.hbm %s3470_s3, 1024  ;;  %s2938_s18 = int_to_ptr.vmem [resolvable:$true] %s239_s18 }
  0x13   : > { %s3484_s13 = scalar_select %p2926_p10, 1, 0 }
  0x14   : > { %p2638_p11 = pneg %p2926_p10  ;;  %p2700_p13 = scmp.ne.s32.totalorder %s3470_s3, %s2699_s21 }
  0x15   : > { %p2706_p3 = scmp.lt.u32.totalorder %s2699_s21, %s3470_s3 }
  0x16   : > { %p2934_p12 = pnand %p3475_p9, %p2638_p11 }
  0x18   : > { %p2701_p0 = pneg %p2934_p12 }
  0x1a   : > { %p2702_p1 = pnand %p2701_p0, %p2700_p13 }
  0x1c   : > { %p2703_p2 = pneg %p2702_p1 }
  0x1e   : > { %p2708_p4 = pnand %p2706_p3, %p2703_p2 }
  0x20   : > { %2711 = shalt.err (!%p2708_p4)
}
  0x21   : > { %s2712_s9 = scalar_lea.vmem %s224_s15, 1024  ;;  %p2720_p9 = scmp.lt.s32.totalorder %s224_s15, %s224_s15 }
  0x22   : > { %p2713_p7 = scmp.ne.s32.totalorder %s224_s15, %s2712_s9  ;;  %p2721_p6 = scmp.lt.s32.totalorder %s2712_s9, %s2712_s9 }
  0x24   : > { %p2715_p8 = pnand %p2713_p7, %p2701_p0  ;;  %p2722_p5 = por %p2721_p6, %p2720_p9 }
  0x26   : > { %p2716_p11 = pneg %p2715_p8 }
  0x28   : > { %p2723_p10 = pnand %p2722_p5, %p2716_p11 }
  0x2a   : > { %2726 = shalt.err (!%p2723_p10)
}
  0x2b   : > { %s2829_s14 = smov 128   ;;  %s2830_s17 = smov 8  }
  0x2c   : > { %2641 = dma.hbm_to_vmem [thread:$0]  (!%p2934_p12), %s3470_s3, 1024, %s224_s15, [#allocation3], %s2829_s14, %s2829_s14, %s2830_s17  }
  0x2d   : > { %s2727_s23 = scalar_lea.hbm %s3472_s5, 2048 }
  0x2e   : > { %p2728_p13 = scmp.ne.s32.totalorder %s3472_s5, %s2727_s23  ;;  %p2734_p9 = scmp.lt.u32.totalorder %s2727_s23, %s3472_s5 }
  0x30   : > { %p2730_p5 = pnand %p2728_p13, %p2701_p0 }
  0x32   : > { %p2731_p6 = pneg %p2730_p5 }
  0x34   : > { %p2736_p10 = pnand %p2734_p9, %p2731_p6 }
  0x36   : > { %2739 = shalt.err (!%p2736_p10)
}
  0x37   : > { %s2740_s15 = scalar_lea.vmem %s2938_s18, 2048  ;;  %p2748_p4 = scmp.lt.s32.totalorder %s2938_s18, %s2938_s18 }
  0x38   : > { %p2741_p1 = scmp.ne.s32.totalorder %s2938_s18, %s2740_s15  ;;  %p2749_p7 = scmp.lt.s32.totalorder %s2740_s15, %s2740_s15 }
  0x3a   : > { %p2743_p2 = pnand %p2741_p1, %p2701_p0  ;;  %p2750_p8 = por %p2749_p7, %p2748_p4 }
  0x3c   : > { %p2744_p3 = pneg %p2743_p2 }
  0x3e   : > { %p2751_p11 = pnand %p2750_p8, %p2744_p3 }
  0x40   : > { %2754 = shalt.err (!%p2751_p11)
}
  0x41   : > { %s2831_s10 = smov 256   ;;  %s2832_s14 = smov 16  }
  0x42   : > { %2644 = dma.hbm_to_vmem [thread:$0]  (!%p2934_p12), %s3472_s5, 2048, %s2938_s18, [#allocation6], %s2831_s10, %s2831_s10, %s2832_s14  }
  0x43   : > { %p3486_p13 = scmp.ne.s32.totalorder %s3484_s13, 0 }
  0x44   : > { %p3487_p0 = scmp.eq.s32.totalorder (!%p3486_p13), %s2898_s28, 0 }
  0x45   : > { %265 = sbr.rel (%p3486_p13) target bundleno = 987 (0x3db), region = 48 }
  0x4c   : > { %2800 = dma.done.wait (%p3487_p0), [#allocation3], 1024   ;;  %p3488_p5 = pmov %p3487_p0 }
  0x4d   : > { %p3489_p6 = pmov %p3487_p0 }
  0x4e   : > { %2802 = vsyncadd (%p3488_p5), [#allocation3], 4294966272 }
  0x4f   : > { %2804 = dma.done.wait (%p3489_p6), [#allocation6], 2048   ;;  %p3490_p9 = pmov %p3487_p0 }
  0x50   : > { %v2833_v0 = vmov 0.0|0.0   ;;  %vm2834_vm0 = vmmov 0   ;;  %v3478_v1 = vmov 0.0   ;;  %p300_p12 = scmp.lt.s32.totalorder %s2898_s28, 1  ;;  %vm319_vm1 = vcmask 1041408   ;;  %v305_v2 = vld [vmem:[%s3468_s1] sm:$0xff] }
  0x51   : > { %2806 = vsyncadd (%p3490_p9), [#allocation6], 4294965248  ;;  %2408 = vmatprep.subr.bf16.mxu0 %v2833_v0  ;;  %2246 = vmatprep.mubr.msk.f32.mxu0 %vm2834_vm0, %v3478_v1  ;;  %vm315_vm2 = vcmask 146432   ;;  %v306_v3 = vld [vmem:[%s3468_s1 + $0x8] sm:$0xff]  ;;  %v307_v4 = vld [vmem:[%s3468_s1 + $0x10] sm:$0x3] }
  0x52   : > { %2426 = vmatprep.subr.bf16.mxu1 %v2833_v0  ;;  %2310 = vmatprep.mubr.msk.f32.mxu1 %vm2834_vm0, %v3478_v1  ;;  %s301_s13 = scalar_select %p300_p12, %s2898_s28, 1  ;;  %v324_v5 = vand.u32 4294901760, %v305_v2  ;;  %v327_v6 = vand.u32 4294901760, %v306_v3  ;;  %v321_v7 = vsel %vm319_vm1, %v307_v4, 0  ;;  %v799_v32 = vld [vmem:[#allocation2] sm:$0xff]  ;;  %v800_v33 = vld [vmem:[#allocation2 + $0x8] sm:$0xff] }
  0x53   : > { %v330_v9 = vand.u32 4294901760, %v321_v7  ;;  %v822_v34 = vand.u32 4294901760, %v799_v32  ;;  %v825_v35 = vand.u32 4294901760, %v800_v33  ;;  %v801_v37 = vld [vmem:[#allocation2 + $0x10] sm:$0xff]  ;;  %v802_v38 = vld [vmem:[#allocation2 + $0x18] sm:$0xff]  ;;  %v803_v42 = vld [vmem:[#allocation2 + $0x20] sm:$0xff] }
  0x54   : > { %s2153_s16 = sshll.u32 %s301_s13, 3  ;;  %v2409_v11 = vpack.c.bf16 %v327_v6, %v324_v5  ;;  %v403_v12 = vsub.f32 %v305_v2, %v324_v5  ;;  %v410_v13 = vsub.f32 %v306_v3, %v327_v6  ;;  %v828_v39 = vand.u32 4294901760, %v801_v37  ;;  %v804_v43 = vld [vmem:[#allocation2 + $0x28] sm:$0xff]  ;;  %v806_v49 = vld [vmem:[#allocation2 + $0x38] sm:$0x3]  ;;  %v805_v50 = vld [vmem:[#allocation2 + $0x30] sm:$0xff] }
  0x55   : > { %s303_s21 = scalar_lea.vmem %s3467_s0, %s2153_s16  ;;  %v417_v15 = vsub.f32 %v321_v7, %v330_v9  ;;  %v3040_v36 = vpack.c.bf16 %v825_v35, %v822_v34  ;;  %v831_v40 = vand.u32 4294901760, %v802_v38  ;;  %v834_v44 = vand.u32 4294901760, %v803_v42  ;;  %s297_s13 = sand.u32 1, %s2817_s25  }
  0x56   : > { %v304_v8 = vld [vmem:[%s303_s21] sm:$0xff]  ;;  %2410 = vmatpush3.bf16.msra.mxu0 %v2409_v11  ;;  %v404_v17 = vand.u32 4294901760, %v403_v12  ;;  %v411_v18 = vand.u32 4294901760, %v410_v13  ;;  %v2415_v30 = vpack.c.bf16 %v410_v13, %v403_v12  ;;  %v837_v45 = vand.u32 4294901760, %v804_v43  ;;  %s2152_s20 = sshll.u32 %s297_s13, 4  ;;  %s2161_s21 = sshll.u32 %s2898_s28, 8 }
  0x57   : > { %v317_v10 = vsel %vm315_vm2, %v304_v8, 0  ;;  %2244 = vmatprep.subr.mxu0 %v3478_v1  ;;  %v418_v19 = vand.u32 4294901760, %v417_v15  ;;  %2428 = vmatpush3.bf16.msra.mxu1 %v3040_v36  ;;  %v3044_v41 = vpack.c.bf16 %v831_v40, %v828_v39  ;;  %v3048_v46 = vsub.f32 %v799_v32, %v822_v34  ;;  %s299_s22 = scalar_lea.vmem [#allocation7], %s2152_s20  ;;  %s3425_s9 = scalar_lea.hbm %s3474_s7, %s2161_s21 }
  0x58   : > { %v391_v14 = vand.u32 4294901760, %v317_v10  ;;  %v405_v21 = vsub.f32 %v403_v12, %v404_v17  ;;  %v412_v22 = vsub.f32 %v410_v13, %v411_v18  ;;  %v2421_v31 = vpack.c.bf16 %v411_v18, %v404_v17  ;;  %2429 = vmatprep.subr.bf16.mxu1 %v2833_v0  ;;  %s2063_s23 = sshll.u32 %s299_s22, 4  ;;  %s2049_s28 = scalar_lea.sflag [#allocation4], %s297_s13  ;;  %s3427_s23 = int_to_ptr.vmem [resolvable:$true] %s2063_s23 }
  0x59   : > { %v419_v26 = vsub.f32 %v417_v15, %v418_v19  ;;  %v3050_v47 = vsub.f32 %v800_v33, %v825_v35  ;;  %v3052_v48 = vpack.c.bf16 %v837_v45, %v834_v44  ;;  %v819_v51 = vsel %vm319_vm1, %v806_v49, 0  ;;  %v2154_v35 = vld [vmem:[%s3469_s2] ss:$0 sm:$0xff]  ;;  %s2755_s15 = scalar_lea.vmem %s3427_s23, 256  ;;  %p3493_p1 = scmp.ne.s32.totalorder %s3482_s11, 0 }
  0x5a   : > { %v392_v16 = vsub.f32 %v317_v10, %v391_v14  ;;  %2245 = vmatpush3.msra.mxu0 %v330_v9  ;;  %v406_v24 = vand.u32 4294901760, %v405_v21  ;;  %v413_v25 = vand.u32 4294901760, %v412_v22  ;;  %v3055_v52 = vsub.f32 %v801_v37, %v828_v39  ;;  %p2756_p10 = scmp.ne.s32.totalorder %s3427_s23, %s2755_s15  ;;  %s2836_s10 = smov [#allocation7]  }
  0x5b   : > { %2411 = vmatprep.subr.bf16.mxu0 %v2833_v0  ;;  %v420_v29 = vand.u32 4294901760, %v419_v26  ;;  %2431 = vmatpush3.bf16.msra.mxu1 %v3044_v41  ;;  %v3057_v53 = vsub.f32 %v802_v38, %v831_v40  ;;  %v3060_v54 = vsub.f32 %v803_v42, %v834_v44  ;;  %v3062_v55 = vsub.f32 %v804_v43, %v837_v45  ;;  %s2759_s14 = sshll.u32 %s2836_s10, 4  ;;  %s2760_s14 = int_to_ptr.vmem [resolvable:$false] %s2759_s14 }
  0x5c   : > { %v393_v20 = vand.u32 4294901760, %v392_v16  ;;  %v2412_v28 = vpack.c.bf16 %v413_v25, %v406_v24  ;;  %2432 = vmatprep.subr.bf16.mxu1 %v2833_v0  ;;  %v840_v56 = vand.u32 4294901760, %v805_v50  ;;  %v843_v57 = vand.u32 4294901760, %v819_v51  ;;  %p2757_p2 = pnand %p2756_p10, %p3493_p1  ;;  %s2761_s17 = scalar_lea.vmem %s2760_s14, 512 }
  0x5d   : > { %v907_v58 = vand.u32 4294901760, %v3048_v46  ;;  %v914_v59 = vand.u32 4294901760, %v3050_v47  ;;  %v921_v4 = vand.u32 4294901760, %v3055_v52  ;;  %v928_v5 = vand.u32 4294901760, %v3057_v53  ;;  %p2762_p4 = scmp.lt.s32.totalorder %s3427_s23, %s2760_s14  ;;  %p2763_p7 = scmp.lt.s32.totalorder %s2761_s17, %s2755_s15 }
  0x5e   : > { %v394_v23 = vsub.f32 %v392_v16, %v393_v20  ;;  %v3067_v60 = vpack.c.bf16 %v843_v57, %v840_v56  ;;  %v3069_v61 = vsub.f32 %v805_v50, %v840_v56  ;;  %v3071_v62 = vsub.f32 %v819_v51, %v843_v57  ;;  %p2758_p3 = pneg %p2757_p2 }
  0x5f   : > { %2434 = vmatpush3.bf16.msra.mxu1 %v3052_v48  ;;  %v908_v63 = vsub.f32 %v3048_v46, %v907_v58  ;;  %v915_v2 = vsub.f32 %v3050_v47, %v914_v59  ;;  %v922_v7 = vsub.f32 %v3055_v52, %v921_v4  ;;  %v929_v8 = vsub.f32 %v3057_v53, %v928_v5  ;;  %p2764_p8 = por %p2763_p7, %p2762_p4 }
  0x60   : > { %v395_v27 = vand.u32 4294901760, %v394_v23  ;;  %2435 = vmatprep.subr.bf16.mxu1 %v2833_v0  ;;  %v935_v12 = vand.u32 4294901760, %v3060_v54  ;;  %v942_v13 = vand.u32 4294901760, %v3062_v55  ;;  %v2478_v32 = vpack.c.bf16 %v928_v5, %v921_v4  ;;  %v3179_v4 = vld [vmem:[#allocation5 + $0x20] sm:$0xff]  ;;  %v3181_v5 = vld [vmem:[#allocation5 + $0x30] sm:$0xff] }
  0x61   : > { %v909_v3 = vand.u32 4294901760, %v908_v63  ;;  %v916_v6 = vand.u32 4294901760, %v915_v2  ;;  %v923_v10 = vand.u32 4294901760, %v922_v7  ;;  %vm814_vm3 = vcmask 474112   ;;  %p2765_p11 = pnand %p2764_p8, %p2758_p3 }
  0x62   : > { %2247 = vmatmul.mubr.f32.vlgmr.msra.gmra.mrb[0].mxu0 %v395_v27  ;;  %v2451_v27 = vpack.c.bf16 %v3050_v47, %v3048_v46  ;;  %v2481_v33 = vpack.c.bf16 %v942_v13, %v935_v12 }
  0x63   : > { %2413 = vmatpush3.bf16.msra.mxu0 %v2412_v28  ;;  %2255 = vmatprep.mubr.msk.f32.mxu0 %vm2834_vm0, %v3478_v1  ;;  %v2454_v28 = vpack.c.bf16 %v3057_v53, %v3055_v52  ;;  %v3139_v52 = vld [vmem:[#allocation5 + $0x8] sm:$0xff] }
  0x64   : > { %2253 = vmatprep.subr.mxu0 %v3478_v1  ;;  %2437 = vmatpush3.bf16.msra.mxu1 %v3067_v60  ;;  %v1399_v53 = vand.u32 4294901760, %v3139_v52 }
  0x65   : > { %2438 = vmatprep.subr.bf16.mxu1 %v2833_v0 }
  0x66   : > { %v3154_v56 = vsub.f32 %v3139_v52, %v1399_v53 }
  0x67   : > { %2254 = vmatpush3.msra.mxu0 %v420_v29  ;;  %v2457_v29 = vpack.c.bf16 %v3062_v55, %v3060_v54 }
  0x68   : > { %2414 = vmatprep.subr.bf16.mxu0 %v2833_v0 }
  0x6a   : > { %2256 = vmatmul.mubr.f32.vlgmr.msra.gmra.mrb[0].mxu0 %v391_v14 }
  0x6b   : > { %2416 = vmatpush3.bf16.msra.mxu0 %v2415_v30  ;;  %2264 = vmatprep.mubr.msk.f32.mxu0 %vm2834_vm0, %v3478_v1  ;;  %v2460_v30 = vpack.c.bf16 %v3071_v62, %v3069_v61 }
  0x6c   : > { %2262 = vmatprep.subr.mxu0 %v3478_v1 }
  0x6f   : > { %2263 = vmatpush3.msra.mxu0 %v417_v15  ;;  %v936_v15 = vsub.f32 %v3060_v54, %v935_v12 }
  0x70   : > { %2417 = vmatprep.subr.bf16.mxu0 %v2833_v0 }
  0x71   : > { %v937_v17 = vand.u32 4294901760, %v936_v15 }
  0x72   : > { %2265 = vmatmul.mubr.f32.vlgmr.msra.gmra.mrb[0].mxu0 %v392_v16  ;;  %v943_v16 = vsub.f32 %v3062_v55, %v942_v13  ;;  %v3147_v55 = vld [vmem:[#allocation5 + $0x10] sm:$0xff] }
  0x73   : > { %2419 = vmatpush3.bf16.msra.mxu0 %v2409_v11  ;;  %2273 = vmatprep.mubr.msk.f32.mxu0 %vm2834_vm0, %v3478_v1 }
  0x74   : > { %2271 = vmatprep.subr.mxu0 %v3478_v1  ;;  %v944_v18 = vand.u32 4294901760, %v943_v16 }
  0x76   : > { %v2445_v21 = vpack.c.bf16 %v944_v18, %v937_v17  ;;  %v3219_v18 = vld [vmem:[#allocation5 + $0x48] sm:$0xff] }
  0x77   : > { %2272 = vmatpush3.msra.mxu0 %v330_v9 }
  0x78   : > { %2420 = vmatprep.subr.bf16.mxu0 %v2833_v0 }
  0x7a   : > { %2274 = vmatmul.mubr.f32.vlgmr.msra.gmra.mrb[0].mxu0 %v393_v20  ;;  %v956_v20 = vand.u32 4294901760, %v3071_v62 }
  0x7b   : > { %2422 = vmatpush3.bf16.msra.mxu0 %v2421_v31  ;;  %2282 = vmatprep.mubr.msk.f32.mxu0 %vm2834_vm0, %v3478_v1  ;;  %v2475_v31 = vpack.c.bf16 %v914_v59, %v907_v58 }
  0x7c   : > { %2280 = vmatprep.subr.mxu0 %v3478_v1  ;;  %v957_v23 = vsub.f32 %v3071_v62, %v956_v20  ;;  %v1493_v62 = vand.u32 4294901760, %v3154_v56 }
  0x7e   : > { %v958_v25 = vand.u32 4294901760, %v957_v23  ;;  %v3223_v23 = vld [vmem:[#allocation5 + $0x58] sm:$0xff] }
  0x7f   : > { %2281 = vmatpush3.msra.mxu0 %v418_v19  ;;  %v949_v19 = vand.u32 4294901760, %v3069_v61 }
  0x80   : > { %2423 = vmatprep.subr.bf16.mxu0 %v2833_v0 }
  0x81   : > { %v950_v22 = vsub.f32 %v3069_v61, %v949_v19  ;;  %v2484_v34 = vpack.c.bf16 %v956_v20, %v949_v19  ;;  %v3173_v61 = vld [vmem:[#allocation5 + $0x38] sm:$0xff] }
  0x82   : > { %2283 = vmatmul.mubr.f32.vlgmr.msra.gmra.mrb[0].mxu0 %v391_v14 }
  0x83   : > { %2425 = vmatpush3.bf16.msra.mxu0 %v2409_v11  ;;  %2291 = vmatprep.mubr.msk.f32.mxu0 %vm2834_vm0, %v3478_v1  ;;  %v930_v11 = vand.u32 4294901760, %v929_v8  ;;  %v951_v24 = vand.u32 4294901760, %v950_v22  ;;  %v1409_v8 = vand.u32 4294901760, %v3179_v4 }
  0x84   : > { %2289 = vmatprep.subr.mxu0 %v3478_v1 }
  0x85   : > { %v2448_v26 = vpack.c.bf16 %v958_v25, %v951_v24  ;;  %v3212_v16 = vsub.f32 %v3179_v4, %v1409_v8 }
  0x87   : > { %2290 = vmatpush3.msra.mxu0 %v330_v9  ;;  %v2439_v9 = vpack.c.bf16 %v916_v6, %v909_v3  ;;  %v1411_v3 = vand.u32 4294901760, %v3173_v61 }
  0x89   : > { %v3201_v13 = vsub.f32 %v3173_v61, %v1411_v3 }
  0x8a   : > { %2292 = vmatmul.mubr.f32.vlgmr.msra.gmra.mrb[0].mxu0 %v391_v14  ;;  %v2442_v14 = vpack.c.bf16 %v930_v11, %v923_v10  ;;  %v1494_v10 = vsub.f32 %v3154_v56, %v1493_v62 }
  0x8b   : > { %1635 = vmatprep.mubr.f32.mxu0 %v3478_v1  ;;  %v1529_v22 = vand.u32 4294901760, %v3201_v13 }
  0x8c   : > { %v1495_v19 = vand.u32 4294901760, %v1494_v10 }
 0x15d   : > { %v791_v37 = vpop.f32.mrb[0].mxu0 }
 0x15e   : > { %v2594_v38 = vadd.f32 %v2154_v35, %v791_v37  ;;  %v2293_v39 = vpop.f32.mrb[1].mxu0 }
 0x15f   : > { %v1377_v39 = vld [vmem:[#allocation5 + $0x78] sm:$0x3] }
 0x160   : > { %v795_v40 = vand.u32 2147483647, %v2594_v38 }
 0x162   : > { %v796_v42 = vadd.f32 1.0, %v795_v40 }
 0x164   : > { %2695 = vrcp.f32 %v796_v42 }
 0x16e   : > { %v2696_v43 = vpop.eup %2695 }
 0x16f   : > { %v798_v44 = vmul.f32 %v2696_v43, %v2594_v38  ;;  %v1419_v38 = vand.u32 4294901760, %v3223_v23 }
 0x171   : > { %v816_v45 = vsel %vm814_vm3, %v798_v44, 0 }
 0x172   : > { %v894_v46 = vand.u32 4294901760, %v816_v45 }
 0x174   : > { %v895_v47 = vsub.f32 %v816_v45, %v894_v46  ;;  %v3251_v45 = vld [vmem:[#allocation5 + $0x68] sm:$0xff] }
 0x176   : > { %v896_v49 = vand.u32 4294901760, %v895_v47 }
 0x178   : > { %v897_v50 = vsub.f32 %v895_v47, %v896_v49 }
 0x17a   : > { %v898_v51 = vand.u32 4294901760, %v897_v50 }
 0x17c   : > { %2311 = vmatmul.mubr.f32.vlgmr.msra.gmra.mrb[0].mxu1 %v898_v51  ;;  %v1376_v51 = vld [vmem:[#allocation5 + $0x70] sm:$0x3] }
 0x17d   : > { %2440 = vmatpush3.bf16.msra.mxu1 %v2439_v9  ;;  %2329 = vmatprep.mubr.msk.f32.mxu1 %vm2834_vm0, %v3478_v1  ;;  %v1413_v9 = vand.u32 4294901760, %v3181_v5 }
 0x17e   : > { %2441 = vmatprep.subr.bf16.mxu1 %v2833_v0 }
 0x17f   : > { %v3217_v17 = vsub.f32 %v3181_v5, %v1413_v9 }
 0x181   : > { %2443 = vmatpush3.bf16.msra.mxu1 %v2442_v14 }
 0x182   : > { %2444 = vmatprep.subr.bf16.mxu1 %v2833_v0 }
 0x185   : > { %2446 = vmatpush3.bf16.msra.mxu1 %v2445_v21 }
 0x186   : > { %2447 = vmatprep.subr.bf16.mxu1 %v2833_v0 }
 0x189   : > { %2449 = vmatpush3.bf16.msra.mxu1 %v2448_v26  ;;  %v1523_v26 = vand.u32 4294901760, %v3212_v16 }
 0x18a   : > { %2450 = vmatprep.subr.bf16.mxu1 %v2833_v0 }
 0x18b   : > { %v1524_v35 = vsub.f32 %v3212_v16, %v1523_v26 }
 0x18c   : > { %2330 = vmatmul.mubr.f32.vlgmr.msra.gmra.mrb[0].mxu1 %v894_v46 }
 0x18d   : > { %2452 = vmatpush3.bf16.msra.mxu1 %v2451_v27  ;;  %2348 = vmatprep.mubr.msk.f32.mxu1 %vm2834_vm0, %v3478_v1  ;;  %v1535_v27 = vand.u32 4294901760, %v3217_v17 }
 0x18e   : > { %2453 = vmatprep.subr.bf16.mxu1 %v2833_v0 }
 0x18f   : > { %v1536_v37 = vsub.f32 %v3217_v17, %v1535_v27 }
 0x191   : > { %2455 = vmatpush3.bf16.msra.mxu1 %v2454_v28  ;;  %v3227_v28 = vld [vmem:[#allocation5 + $0x40] sm:$0xff] }
 0x192   : > { %2456 = vmatprep.subr.bf16.mxu1 %v2833_v0  ;;  %v1417_v44 = vand.u32 4294901760, %v3227_v28 }
 0x195   : > { %2458 = vmatpush3.bf16.msra.mxu1 %v2457_v29 }
 0x196   : > { %2459 = vmatprep.subr.bf16.mxu1 %v2833_v0 }
 0x199   : > { %2461 = vmatpush3.bf16.msra.mxu1 %v2460_v30 }
 0x19a   : > { %2462 = vmatprep.subr.bf16.mxu1 %v2833_v0 }
 0x19c   : > { %2349 = vmatmul.mubr.f32.vlgmr.msra.gmra.mrb[0].mxu1 %v895_v47  ;;  %v1537_v47 = vand.u32 4294901760, %v1536_v37 }
 0x19d   : > { %2464 = vmatpush3.bf16.msra.mxu1 %v3040_v36  ;;  %2367 = vmatprep.mubr.msk.f32.mxu1 %vm2834_vm0, %v3478_v1 }
 0x19e   : > { %2465 = vmatprep.subr.bf16.mxu1 %v2833_v0 }
 0x1a1   : > { %2467 = vmatpush3.bf16.msra.mxu1 %v3044_v41 }
 0x1a2   : > { %2468 = vmatprep.subr.bf16.mxu1 %v2833_v0 }
 0x1a5   : > { %2470 = vmatpush3.bf16.msra.mxu1 %v3052_v48 }
 0x1a6   : > { %2471 = vmatprep.subr.bf16.mxu1 %v2833_v0 }
 0x1a9   : > { %2473 = vmatpush3.bf16.msra.mxu1 %v3067_v60 }
 0x1aa   : > { %2474 = vmatprep.subr.bf16.mxu1 %v2833_v0 }
 0x1ac   : > { %2368 = vmatmul.mubr.f32.vlgmr.msra.gmra.mrb[0].mxu1 %v896_v49  ;;  %v3256_v49 = vsub.f32 %v3223_v23, %v1419_v38 }
 0x1ad   : > { %2476 = vmatpush3.bf16.msra.mxu1 %v2475_v31  ;;  %2386 = vmatprep.mubr.msk.f32.mxu1 %vm2834_vm0, %v3478_v1  ;;  %v1530_v31 = vsub.f32 %v3201_v13, %v1529_v22 }
 0x1ae   : > { %2477 = vmatprep.subr.bf16.mxu1 %v2833_v0 }
 0x1af   : > { %v1531_v42 = vand.u32 4294901760, %v1530_v31 }
 0x1b1   : > { %2479 = vmatpush3.bf16.msra.mxu1 %v2478_v32  ;;  %v1415_v32 = vand.u32 4294901760, %v3219_v18 }
 0x1b2   : > { %2480 = vmatprep.subr.bf16.mxu1 %v2833_v0 }
 0x1b3   : > { %v3248_v43 = vsub.f32 %v3219_v18, %v1415_v32 }
 0x1b5   : > { %2482 = vmatpush3.bf16.msra.mxu1 %v2481_v33  ;;  %v3236_v33 = vld [vmem:[#allocation5 + $0x50] sm:$0xff] }
 0x1b6   : > { %2483 = vmatprep.subr.bf16.mxu1 %v2833_v0  ;;  %v1421_v50 = vand.u32 4294901760, %v3236_v33 }
 0x1b9   : > { %2485 = vmatpush3.bf16.msra.mxu1 %v2484_v34 }
 0x1ba   : > { %2486 = vmatprep.subr.bf16.mxu1 %v2833_v0 }
 0x1bc   : > { %2387 = vmatmul.mubr.f32.vlgmr.msra.gmra.mrb[0].mxu1 %v894_v46 }
 0x1bd   : > { %2488 = vmatpush3.bf16.msra.mxu1 %v3040_v36  ;;  %2405 = vmatprep.mubr.msk.f32.mxu1 %vm2834_vm0, %v3478_v1  ;;  %v3141_v36 = vld [vmem:[#allocation5 + $0x18] sm:$0xff] }
 0x1be   : > { %2489 = vmatprep.subr.bf16.mxu1 %v2833_v0  ;;  %v1403_v54 = vand.u32 4294901760, %v3141_v36 }
 0x1c0   : > { %v3159_v57 = vsub.f32 %v3141_v36, %v1403_v54 }
 0x1c1   : > { %2491 = vmatpush3.bf16.msra.mxu1 %v3044_v41  ;;  %v3145_v41 = vld [vmem:[#allocation5] sm:$0xff] }
 0x1c2   : > { %2492 = vmatprep.subr.bf16.mxu1 %v2833_v0  ;;  %v1505_v63 = vand.u32 4294901760, %v3159_v57  ;;  %v2530_v5 = vpack.c.bf16 %v3159_v57, %v3154_v56 }
 0x1c4   : > { %v1506_v11 = vsub.f32 %v3159_v57, %v1505_v63 }
 0x1c5   : > { %2494 = vmatpush3.bf16.msra.mxu1 %v3052_v48  ;;  %v1401_v48 = vand.u32 4294901760, %v3145_v41 }
 0x1c6   : > { %2495 = vmatprep.subr.bf16.mxu1 %v2833_v0  ;;  %v1405_v0 = vand.u32 4294901760, %v3147_v55  ;;  %v1507_v20 = vand.u32 4294901760, %v1506_v11  ;;  %v1541_v11 = vand.u32 4294901760, %v3248_v43 }
 0x1c7   : > { %v3164_v58 = vsub.f32 %v3145_v41, %v1401_v48 }
 0x1c8   : > { %v3169_v59 = vsub.f32 %v3147_v55, %v1405_v0  ;;  %v2514_v29 = vpack.c.bf16 %v1507_v20, %v1495_v19  ;;  %v3266_v19 = vld [vmem:[#allocation5 + $0x60] sm:$0xff] }
 0x1c9   : > { %2497 = vmatpush3.bf16.msra.mxu1 %v3067_v60  ;;  %v3171_v60 = vld [vmem:[#allocation5 + $0x28] sm:$0xff]  ;;  %v1499_v6 = vand.u32 4294901760, %v3164_v58 }
 0x1ca   : > { %v1407_v2 = vand.u32 4294901760, %v3171_v60  ;;  %v1511_v7 = vand.u32 4294901760, %v3169_v59  ;;  %2515 = vmatprep.subr.bf16.mxu0 %v2514_v29  ;;  %v1423_v29 = vand.u32 4294901760, %v3251_v45  ;;  %v2532_v4 = vpack.c.bf16 %v3169_v59, %v3164_v58 }
 0x1cb   : > { %v1500_v14 = vsub.f32 %v3164_v58, %v1499_v6 }
 0x1cc   : > { %2406 = vmatmul.mubr.f32.vlgmr.msra.gmra.mrb[0].mxu1 %v894_v46  ;;  %v3196_v12 = vsub.f32 %v3171_v60, %v1407_v2  ;;  %v1512_v15 = vsub.f32 %v3169_v59, %v1511_v7  ;;  %v1525_v46 = vand.u32 4294901760, %v1524_v35  ;;  %v1394_v35 = vsel %vm319_vm1, %v1376_v51, 0 }
 0x1cd   : > { %1479 = vmatprep.mubr.f32.mxu1 %v3478_v1  ;;  %v1501_v24 = vand.u32 4294901760, %v1500_v14  ;;  %v3263_v14 = vsub.f32 %v3227_v28, %v1417_v44  ;;  %v1429_v51 = vand.u32 4294901760, %v1394_v35  ;;  %v2538_v28 = vpack.c.bf16 %v3256_v49, %v3248_v43 }
 0x1ce   : > { %v1517_v21 = vand.u32 4294901760, %v3196_v12  ;;  %v1513_v25 = vand.u32 4294901760, %v1512_v15  ;;  %v1397_v15 = vsel %vm319_vm1, %v1377_v39, 0  ;;  %v2520_v20 = vpack.c.bf16 %v1537_v47, %v1525_v46 }
 0x1cf   : > { %v1547_v31 = vand.u32 4294901760, %v3263_v14  ;;  %v3283_v39 = vsub.f32 %v3251_v45, %v1423_v29  ;;  %v2534_v18 = vpack.c.bf16 %v3201_v13, %v3196_v12 }
 0x1d0   : > { %v1518_v30 = vsub.f32 %v3196_v12, %v1517_v21  ;;  %v2516_v34 = vpack.c.bf16 %v1513_v25, %v1501_v24  ;;  %v1553_v24 = vand.u32 4294901760, %v3256_v49  ;;  %v3270_v25 = vsub.f32 %v3236_v33, %v1421_v50 }
 0x1d1   : > { %v1548_v46 = vsub.f32 %v3263_v14, %v1547_v31 }
 0x1d2   : > { %v1519_v40 = vand.u32 4294901760, %v1518_v30  ;;  %2517 = vmatpush1.bf16.msra.mxu0 %v2516_v34  ;;  %v1542_v30 = vsub.f32 %v3248_v43, %v1541_v11  ;;  %v1427_v34 = vand.u32 4294901760, %v1397_v15  ;;  %v1554_v37 = vsub.f32 %v3256_v49, %v1553_v24 }
 0x1d3   : > { %v3480_v33 = vand.u32 4294901760, %v3270_v25  ;;  %v1549_v1 = vand.u32 4294901760, %v1548_v46  ;;  %v2570_v56 = vpack.c.bf16 %v1553_v24, %v1541_v11  ;;  %v3491_v57 = vand.u32 4294901760, %v3270_v25 }
 0x1d4   : > { %v2518_v10 = vpack.c.bf16 %v1531_v42, %v1519_v40  ;;  %v1425_v40 = vand.u32 4294901760, %v3266_v19  ;;  %v1543_v42 = vand.u32 4294901760, %v1542_v30  ;;  %v3289_v47 = vsub.f32 %v1397_v15, %v1427_v34 }
 0x1d5   : > { %v1560_v45 = vsub.f32 %v3270_v25, %v3480_v33  ;;  %v1565_v30 = vand.u32 4294901760, %v3283_v39  ;;  %v3305_v15 = vpack.c.bf16 %v1405_v0, %v1401_v48  ;;  %v3313_v33 = vsub.f32 %v1394_v35, %v1429_v51 }
 0x1d6   : > { %2519 = vmatprep.subr.bf16.mxu0 %v2518_v10  ;;  %v1555_v10 = vand.u32 4294901760, %v1554_v37  ;;  %v1577_v37 = vand.u32 4294901760, %v3289_v47  ;;  %v3309_v52 = vsub.f32 %v3266_v19, %v1425_v40  ;;  %v3322_v19 = vpack.c.bf16 %v1411_v3, %v1407_v2 }
 0x1d7   : > { %2521 = vmatpush1.bf16.msra.mxu0 %v2520_v20  ;;  %v3295_v20 = vpack.c.bf16 %v1403_v54, %v1399_v53  ;;  %v1561_v53 = vand.u32 4294901760, %v1560_v45  ;;  %v1566_v54 = vsub.f32 %v3283_v39, %v1565_v30  ;;  %v3339_v3 = vpack.c.bf16 %v1419_v38, %v1415_v32 }
 0x1d8   : > { %v2522_v36 = vpack.c.bf16 %v1555_v10, %v1543_v42  ;;  %v1578_v41 = vsub.f32 %v3289_v47, %v1577_v37  ;;  %v1571_v55 = vand.u32 4294901760, %v3309_v52  ;;  %v1583_v42 = vand.u32 4294901760, %v3313_v33 }
 0x1d9   : > { %2499 = vmatprep.subr.bf16.mxu1 %v3295_v20  ;;  %v2524_v48 = vpack.c.bf16 %v1561_v53, %v1549_v1  ;;  %v1567_v0 = vand.u32 4294901760, %v1566_v54  ;;  %v3330_v10 = vpack.c.bf16 %v1413_v9, %v1409_v8  ;;  %v3348_v9 = vpack.c.bf16 %v1421_v50, %v1417_v44 }
 0x1da   : > { %2501 = vmatpush1.bf16.msra.mxu1 %v3305_v15  ;;  %2523 = vmatprep.subr.bf16.mxu0 %v2522_v36  ;;  %v1579_v46 = vand.u32 4294901760, %v1578_v41  ;;  %v1572_v35 = vsub.f32 %v3309_v52, %v1571_v55  ;;  %v1584_v1 = vsub.f32 %v3313_v33, %v1583_v42  ;;  %v3353_v23 = vpack.c.bf16 %v1427_v34, %v1423_v29 }
 0x1db   : > { %2525 = vmatpush1.bf16.msra.mxu0 %v2524_v48  ;;  %2503 = vmatprep.subr.bf16.mxu1 %v3322_v19  ;;  %v2536_v32 = vpack.c.bf16 %v3217_v17, %v3212_v16  ;;  %v3358_v38 = vpack.c.bf16 %v1429_v51, %v1425_v40  ;;  %v2540_v44 = vpack.c.bf16 %v3270_v25, %v3263_v14  ;;  %v3492_v43 = vmov 0.0  }
 0x1dc   : > { %v2526_v60 = vpack.c.bf16 %v1579_v46, %v1567_v0  ;;  %v1573_v61 = vand.u32 4294901760, %v1572_v35  ;;  %v1585_v2 = vand.u32 4294901760, %v1584_v1  ;;  %v2542_v50 = vpack.c.bf16 %v3289_v47, %v3283_v39 }
 0x1dd   : > { %v2544_v29 = vpack.c.bf16 %v3313_v33, %v3309_v52  ;;  %v2562_v34 = vpack.c.bf16 %v1505_v63, %v1493_v62  ;;  %v2564_v40 = vpack.c.bf16 %v1511_v7, %v1499_v6  ;;  %v2566_v51 = vpack.c.bf16 %v1529_v22, %v1517_v21  ;;  %v2155_v63 = vld [vmem:[%s3471_s4] ss:$0 sm:$0xff] }
 0x1de   : > { %2505 = vmatpush1.bf16.msra.mxu1 %v3330_v10  ;;  %2527 = vmatprep.subr.bf16.mxu0 %v2526_v60  ;;  %v2528_v8 = vpack.c.bf16 %v1585_v2, %v1573_v61  ;;  %v2568_v33 = vpack.c.bf16 %v1535_v27, %v1523_v26  ;;  %v2572_v58 = vpack.c.bf16 %v3491_v57, %v1547_v31  ;;  %v1380_v31 = vlaneseq }
 0x1df   : > { %2507 = vmatprep.subr.bf16.mxu1 %v3339_v3  ;;  %v2574_v59 = vpack.c.bf16 %v1577_v37, %v1565_v30  ;;  %v2576_v62 = vpack.c.bf16 %v1583_v42, %v1571_v55 }
 0x1e0   : > { %2529 = vmatpush1.bf16.msra.mxu0 %v2528_v8  ;;  %v1381_v39 = vshrl.u32 %v1380_v31, 7 }
 0x1e1   : > { %2531 = vmatprep.subr.bf16.mxu0 %v2530_v5 }
 0x1e2   : > { %2509 = vmatpush1.bf16.msra.mxu1 %v3348_v9  ;;  %v1382_v47 = vsub.s32 0, %v1381_v39  ;;  %v1386_v45 = vsub.s32 1, %v1381_v39 }
 0x1e3   : > { %2511 = vmatprep.subr.bf16.mxu1 %v3353_v23 }
 0x1e6   : > { %2513 = vmatpush1.bf16.msra.mxu1 %v3358_v38 }
 0x29f   : > { %v1354_v6 = vpop.f32.mrb[0].mxu1 }
 0x2a0   : > { %v2595_v7 = vadd.f32 %v2155_v63, %v1354_v6  ;;  %v2407_v12 = vpop.f32.mrb[1].mxu1 }
 0x2a2   : > { %v1358_v13 = vand.u32 2147483647, %v2595_v7 }
 0x2a4   : > { %v1359_v16 = vadd.f32 1.0, %v1358_v13 }
 0x2a6   : > { %2697 = vrcp.f32 %v1359_v16 }
 0x2b0   : > { %v2698_v17 = vpop.eup %2697 }
 0x2b1   : > { %v1361_v21 = vmul.f32 %v2698_v17, %v2595_v7 }
 0x2b3   : > { %v1391_v22 = vsel %vm814_vm3, %v1361_v21, 0 }
 0x2b4   : > { %v1480_v26 = vand.u32 4294901760, %v1391_v22 }
 0x2b6   : > { %v1481_v27 = vsub.f32 %v1391_v22, %v1480_v26  ;;  %1637 = vmatmul.mubr.f32.vlgmr.msra.gmra.mrb[2].mxu0 %v1480_v26 }
 0x2b7   : > { %2533 = vmatpush1.bf16.msra.mxu0 %v2532_v4  ;;  %1739 = vmatprep.mubr.f32.mxu0 %v3492_v43 }
 0x2b8   : > { %2535 = vmatprep.subr.bf16.mxu0 %v2534_v18  ;;  %v1482_v49 = vand.u32 4294901760, %v1481_v27 }
 0x2ba   : > { %v1483_v11 = vsub.f32 %v1481_v27, %v1482_v49 }
 0x2bb   : > { %2537 = vmatpush1.bf16.msra.mxu0 %v2536_v32 }
 0x2bc   : > { %2539 = vmatprep.subr.bf16.mxu0 %v2538_v28  ;;  %v1484_v14 = vand.u32 4294901760, %v1483_v11 }
 0x2be   : > { %1485 = vmatmul.mubr.f32.vlgmr.msra.gmra.mrb[2].mxu1 %v1484_v14 }
 0x2bf   : > { %2541 = vmatpush1.bf16.msra.mxu0 %v2540_v44 }
 0x2c0   : > { %2543 = vmatprep.subr.bf16.mxu0 %v2542_v50 }
 0x2c3   : > { %2545 = vmatpush1.bf16.msra.mxu0 %v2544_v29 }
 0x2c4   : > { %2547 = vmatprep.subr.bf16.mxu0 %v3295_v20 }
 0x2c6   : > { %1742 = vmatmul.mubr.f32.vlgmr.msra.gmra.mrb[2].mxu0 %v1481_v27 }
 0x2c7   : > { %2549 = vmatpush1.bf16.msra.mxu0 %v3305_v15  ;;  %1828 = vmatprep.mubr.f32.mxu0 %v3492_v43 }
 0x2c8   : > { %2551 = vmatprep.subr.bf16.mxu0 %v3322_v19 }
 0x2cb   : > { %2553 = vmatpush1.bf16.msra.mxu0 %v3330_v10 }
 0x2cc   : > { %2555 = vmatprep.subr.bf16.mxu0 %v3339_v3 }
 0x2cf   : > { %2557 = vmatpush1.bf16.msra.mxu0 %v3348_v9 }
 0x2d0   : > { %2559 = vmatprep.subr.bf16.mxu0 %v3353_v23 }
 0x2d3   : > { %2561 = vmatpush1.bf16.msra.mxu0 %v3358_v38 }
 0x2d4   : > { %2563 = vmatprep.subr.bf16.mxu0 %v2562_v34 }
 0x2d6   : > { %1832 = vmatmul.mubr.f32.vlgmr.msra.gmra.mrb[2].mxu0 %v1482_v49 }
 0x2d7   : > { %2565 = vmatpush1.bf16.msra.mxu0 %v2564_v40  ;;  %1950 = vmatprep.mubr.f32.mxu0 %v3492_v43 }
 0x2d8   : > { %2567 = vmatprep.subr.bf16.mxu0 %v2566_v51 }
 0x2db   : > { %2569 = vmatpush1.bf16.msra.mxu0 %v2568_v33 }
 0x2dc   : > { %2571 = vmatprep.subr.bf16.mxu0 %v2570_v56 }
 0x2df   : > { %2573 = vmatpush1.bf16.msra.mxu0 %v2572_v58 }
 0x2e0   : > { %2575 = vmatprep.subr.bf16.mxu0 %v2574_v59 }
 0x2e3   : > { %2577 = vmatpush1.bf16.msra.mxu0 %v2576_v62 }
 0x2e4   : > { %2579 = vmatprep.subr.bf16.mxu0 %v3295_v20  ;;  %v1378_v20 = vld [vmem:[%s3473_s6] sm:$0x3] }
 0x2e5   : > { %v1383_v30 = vrot.slane %v1378_v20, %v1382_v47 }
 0x2e6   : > { %1952 = vmatmul.mubr.f32.vlgmr.msra.gmra.mrb[2].mxu0 %v1480_v26 }
 0x2e7   : > { %2581 = vmatpush1.bf16.msra.mxu0 %v3305_v15  ;;  %2038 = vmatprep.mubr.f32.mxu0 %v3492_v43  ;;  %v1387_v15 = vrot.slane %v1378_v20, %v1386_v45 }
 0x2e8   : > { %2583 = vmatprep.subr.bf16.mxu0 %v3322_v19 }
 0x2eb   : > { %2585 = vmatpush1.bf16.msra.mxu0 %v3330_v10 }
 0x2ec   : > { %2587 = vmatprep.subr.bf16.mxu0 %v3339_v3 }
 0x2ef   : > { %2589 = vmatpush1.bf16.msra.mxu0 %v3348_v9 }
 0x2f0   : > { %2591 = vmatprep.subr.bf16.mxu0 %v3353_v23 }
 0x2f3   : > { %2593 = vmatpush1.bf16.msra.mxu0 %v3358_v38 }
 0x2f6   : > { %2040 = vmatmul.mubr.f32.vlgmr.msra.gmra.mrb[2].mxu0 %v1480_v26 }
 0x391   : > { %v1486_v24 = vpop.f32.mrb[2].mxu1 }
 0x392   : > { %v1488_v25 = vpop.f32.mrb[3].mxu1  ;;  %v1487_v37 = vadd.f32 %v1486_v24, %v1383_v30 }
 0x393   : > { %v1489_v52 = vadd.f32 %v1488_v25, %v1387_v15 }
 0x3c9   : > { %v2041_v36 = vpop.f32.mrb[2].mxu0 }
 0x3ca   : > { %v2597_v53 = vadd.f32 %v2041_v36, %v1487_v37  ;;  %v2043_v54 = vpop.f32.mrb[3].mxu0 }
 0x3cb   : > { %v2599_v41 = vadd.f32 %v2043_v54, %v1489_v52 }
 0x3cc   : > { %2046 = vst [vmem:[%s299_s22] sm:$0xff] %v2597_v53 }
 0x3cd   : > { %2047 = vst [vmem:[%s299_s22 + $0x8] sm:$0xff] %v2599_v41 }
 0x3ce   : > { %2768 = shalt.err (!%p2765_p11)
}
 0x3cf   : > { %s2769_s19 = scalar_lea.hbm %s3425_s9, 256  ;;  %s2773_s18 = scalar_lea.hbm %s3474_s7, 512 }
 0x3d0   : > { %p2770_p13 = scmp.ne.s32.totalorder %s3425_s9, %s2769_s19  ;;  %p2774_p6 = scmp.lt.u32.totalorder %s3425_s9, %s3474_s7 }
 0x3d1   : > { %p2775_p9 = scmp.lt.u32.totalorder %s2773_s18, %s2769_s19  ;;  %p2777_p10 = scmp.lt.u32.totalorder %s2769_s19, %s3425_s9 }
 0x3d2   : > { %p2771_p0 = pnand %p2770_p13, %p3493_p1 }
 0x3d3   : > { %p2776_p12 = por %p2775_p9, %p2774_p6 }
 0x3d4   : > { %p2772_p5 = pneg %p2771_p0 }
 0x3d5   : > { %p2778_p2 = por %p2777_p10, %p2776_p12 }
 0x3d7   : > { %p2779_p3 = pnand %p2778_p2, %p2772_p5 }
 0x3d9   : > { %2782 = shalt.err (!%p2779_p3)
}
 0x3da   : > { %2636 = dma.vmem_to_hbm [thread:$0]  (%p3493_p1), %s3427_s23, 256, %s3425_s9, %s2049_s28  }
 0x3db PF: > { %p2653_p4 = scmp.ge.s32.totalorder %s2825_s27, 2  ;;  %s2075_s22 = sand.u32 1, %s2813_s24  }
 0x3dc   : > { %p3494_p7 = scmp.ne.s32.totalorder %s3483_s12, 0  ;;  %s2076_s29 = scalar_lea.sflag [#allocation4], %s2075_s22 }
 0x3de   : > { %p2646_p8 = pnand %p2653_p4, %p3494_p7 }
 0x3e0   : > { %2808 = dma.done.wait (!%p2646_p8), %s2076_s29, 256  }
 0x3e1   : > { %2810 = vsyncadd (!%p2646_p8), %s2076_s29, 4294967040  ;;  %s3495_s8 = sld [smem:[#allocation11_spill]]  ;;  %p19_p11 = scmp.ge.s32.totalorder %s2902_s30, 4  }
 0x3e2   : > { %s3496_s24 = smov %s2817_s25  ;;  %s3497_s25 = smov %s2821_s26 }
 0x3e3   : > { %s3499_s27 = smov %s2902_s30  ;;  %21 = sbr.rel (!%p19_p11) target bundleno = 5 (0x5), region = 92 }
 0x3e7   : > { %s3498_s26 = smov %s3495_s8 }
 0x3ea   :  { %2081 = vsyncpa [#allocation3], 1 }
 0x3eb   :  { %2083 = vsyncpa [#allocation3 + $0x1], 1 }
 0x3ec   :  { %2084 = vsyncpa [#allocation6], 1 }
 0x3ed   :  { %2085 = vsyncpa [#allocation4], 1 }
 0x3ee   :  { %2087 = vsyncpa [#allocation4 + $0x1], 1 }

</bundles_post_ra>
